<compile_context>
chip_gen: v5e
topology: v5e:2x2
jax: 0.10.0
libtpu: 0.0.40
codegen_flags: <defaults>
</compile_context>

<pallas_src>
import jax
import jax.numpy as jnp
from jax.experimental import pallas as pl
from jax.experimental.pallas import tpu as pltpu


# ---------------------------------------------------------------------------
# Primary path: one HBM->HBM DMA, no VMEM staging, no grid.
# ---------------------------------------------------------------------------
def _identity_dma_kernel(x_hbm, o_hbm, sem):
    cp = pltpu.make_async_copy(x_hbm, o_hbm, sem)
    cp.start()
    cp.wait()


def identity_dma(x):
    if x.size == 0:
        return x
    nbytes = x.size * x.dtype.itemsize
    return pl.pallas_call(
        _identity_dma_kernel,
        out_shape=jax.ShapeDtypeStruct(x.shape, x.dtype),
        in_specs=[pl.BlockSpec(memory_space=pl.ANY)],   # raw HBM ref, no auto-DMA
        out_specs=pl.BlockSpec(memory_space=pl.ANY),
        scratch_shapes=[pltpu.SemaphoreType.DMA],
        cost_estimate=pl.CostEstimate(
            flops=0, transcendentals=0, bytes_accessed=2 * nbytes),
    )(x)


# ---------------------------------------------------------------------------
# Fallback path: tiled, lane-dense, pipelined VMEM copy.
# ---------------------------------------------------------------------------
def _copy_block_kernel(x_ref, o_ref):
    o_ref[...] = x_ref[...]


_TILE_BYTES = 8 * 1024 * 1024  # per-buffer block budget (2 arrays x 2 bufs = 32 MiB)


def identity_copy_tiled(x):
    orig_shape = x.shape
    n = x.size
    if n == 0:
        return x
    itemsize = x.dtype.itemsize

    width = next((w for w in (2048, 1024, 512, 256, 128) if n % w == 0), None)
    if width is not None:
        # Lane-dense 2-D view: wide 128-multiple last dim -> unmasked stores.
        x2 = x.reshape(-1, width)
        rows, cols = x2.shape
        max_rows = max(8, (_TILE_BYTES // max(1, cols * itemsize)) // 8 * 8)
        tile_rows = rows if rows <= max_rows else max_rows
        block = (tile_rows, cols)
        grid = (pl.cdiv(rows, tile_rows),)
        idx = lambda i: (i, 0)
    else:
        # Awkward element count: flat row, lane-tiled in 128-multiples so no
        # shape ever becomes a whole-array VMEM block.
        # TODO(synk): pad-to-128 lane width to avoid masked partial stores on
        # very large non-128-multiple sizes.
        x2 = x.reshape(1, n)
        if n <= 128 * 1024:
            block = (1, n)                       # full extent: (8,128)-exempt
            grid = (1,)
        else:
            block = (1, 128 * 1024)              # 128-multiple lane tile
            grid = (pl.cdiv(n, 128 * 1024),)
        idx = lambda i: (0, i)

    out2 = pl.pallas_call(
        _copy_block_kernel,
        out_shape=jax.ShapeDtypeStruct(x2.shape, x2.dtype),
        grid=grid,
        in_specs=[pl.BlockSpec(block, idx)],
        out_specs=pl.BlockSpec(block, idx),
        compiler_params=pltpu.CompilerParams(
            dimension_semantics=("parallel",),   # v7x: shard copy over 2 TCs
            vmem_limit_bytes=48 << 20,           # safe on v7x's 64 MiB VMEM
        ),
        cost_estimate=pl.CostEstimate(
            flops=0, transcendentals=0, bytes_accessed=2 * n * itemsize),
    )(x2)
    return out2.reshape(orig_shape)


def identity(x):
    """Identity forward pass: returns a tensor equal to x (same shape/dtype).

    Uses the single HBM->HBM DMA kernel; falls back to the tiled VMEM copy if
    the DMA path cannot be lowered on the current backend.
    """
    try:
        return identity_dma(x)
    except Exception:
        return identity_copy_tiled(x)


if __name__ == "__main__":
    key = jax.random.PRNGKey(0)
    # NCHW input consistent with the module: batch=2, channels=4, 16x16.
    x = jax.random.normal(key, (2, 4, 16, 16), dtype=jnp.float32)

    # Primary (DMA) path.
    y = identity(x)
    jax.block_until_ready(y)
    assert y.shape == x.shape and y.dtype == x.dtype
    assert bool(jnp.array_equal(y, x))

    # Also exercise the tiled VMEM-copy fallback kernel.
    y2 = identity_copy_tiled(x)
    jax.block_until_ready(y2)
    assert y2.shape == x.shape and y2.dtype == x.dtype
    assert bool(jnp.array_equal(y2, x))

    print("KERNEL_OK")
</pallas_src>

<mosaic_0001>
module attributes {stable_mosaic.version = 11 : i64} {
  func.func @_identity_dma_kernel(%arg0: memref<2x4x16x16xf32, #tpu.memory_space<any>>, %arg1: memref<2x4x16x16xf32, #tpu.memory_space<any>>, %arg2: memref<!tpu.dma_semaphore, #tpu.memory_space<semaphore_mem>>) attributes {dimension_semantics = [], scalar_prefetch = 0 : i64, scratch_operands = 1 : i64, tpu.core_type = #tpu.core_type<tc>} {
    tpu.enqueue_dma source(%arg0 : memref<2x4x16x16xf32, #tpu.memory_space<any>>) target(%arg1 : memref<2x4x16x16xf32, #tpu.memory_space<any>>) target_semaphore(%arg2 : memref<!tpu.dma_semaphore, #tpu.memory_space<semaphore_mem>>)
    tpu.wait_dma2 semaphore(%arg2 : memref<!tpu.dma_semaphore, #tpu.memory_space<semaphore_mem>>) src(%arg0 : memref<2x4x16x16xf32, #tpu.memory_space<any>>) dst(%arg1 : memref<2x4x16x16xf32, #tpu.memory_space<any>>)
    return
  }
}

module attributes {stable_mosaic.version = 11 : i64} {
  func.func @_copy_block_kernel(%arg0: i32, %arg1: memref<1x2048xf32, #tpu.memory_space<vmem>>, %arg2: memref<1x2048xf32, #tpu.memory_space<vmem>>) attributes {dimension_semantics = [#tpu.dimension_semantics<parallel>], iteration_bounds = array<i64: 1>, scalar_prefetch = 0 : i64, scratch_operands = 0 : i64, tpu.core_type = #tpu.core_type<tc>, window_params = [{transform_indices = @transform_0, window_bounds = array<i64: 1, 2048>}, {transform_indices = @transform_1, window_bounds = array<i64: 1, 2048>}]} {
    %c0 = arith.constant 0 : index
    %c0_0 = arith.constant 0 : index
    %0 = vector.load %arg1[%c0, %c0_0] : memref<1x2048xf32, #tpu.memory_space<vmem>>, vector<1x2048xf32>
    %c0_1 = arith.constant 0 : index
    %c0_2 = arith.constant 0 : index
    %1 = vector.load %arg2[%c0_1, %c0_2] : memref<1x2048xf32, #tpu.memory_space<vmem>>, vector<1x2048xf32>
    tpu.vector_store %arg2[%c0_1, %c0_2], %0 {strides = array<i32>} : memref<1x2048xf32, #tpu.memory_space<vmem>>, vector<1x2048xf32>,
    return
  }
  func.func @transform_0(%arg0: i32) -> (i32, i32) {
    %c0_i32 = arith.constant 0 : i32
    %c0_i32_0 = arith.constant 0 : i32
    return %arg0, %c0_i32 : i32, i32
  }
  func.func @transform_1(%arg0: i32) -> (i32, i32) {
    %c0_i32 = arith.constant 0 : i32
    %c0_i32_0 = arith.constant 0 : i32
    return %arg0, %c0_i32 : i32, i32
  }
}

</mosaic_0001>

<bundles_post_ra>
// kernel: tpu_custom_call.1
= control target key start
LH: loop header
LB: loop body
LE: loop exit
PB: predicated region body
PF: predicated region fallthrough
CT: control target
= control target key end

     0   :  { %s34_s12 = smov [#allocation2]   ;;  %s35_s13 = smov [#allocation3]   ;;  %s53_s0 = inlined_call_operand.hbm [shape: f32[2,4,16,16], index: 0, kind: input, shape index: {}]   ;;  %s54_s1 = inlined_call_operand.hbm [shape: f32[2,4,16,16], index: 1, kind: output, shape index: {}]  }
   0x1   :  { %s10_s8 = sshll.u32 %s53_s0, 4  ;;  %s12_s11 = sshll.u32 %s54_s1, 4  ;;  %s11_s8 = int_to_ptr.hbm [resolvable:$true] %s10_s8  ;;  %s13_s11 = int_to_ptr.hbm [resolvable:$true] %s12_s11 }
   0x2   :  { %s36_s14 = smov 0  }
   0x3   :  { %16 = dma.general %s11_s8, 2048, %s13_s11, %s34_s12, %s35_s13, [#allocation4], %s36_s14, 0  }
   0x4   :  { %32 = dma.done.wait [#allocation2], 2048 }
   0x5   :  { %33 = vsyncadd [#allocation2], 4294965248 }
   0x6   :  { %22 = vsyncmov [#allocation2] }
   0x9   :  { %s23_s15 = vpop.sfrf %22 }
   0xa   :  { %p28_p0 = scmp.ne.s32.totalorder %s23_s15, 0 }
   0xc   :  { %27 = shalt.err (%p28_p0)  }

// kernel: tpu_custom_call.1
= control target key start
LH: loop header
LB: loop body
LE: loop exit
PB: predicated region body
PF: predicated region fallthrough
CT: control target
= control target key end

     0   :  { %6 = vsyncpa [#allocation3], 0  ;;  %s116_s0 = inlined_call_operand.hbm [shape: f32[1,2048], index: 0, kind: input, shape index: {}]   ;;  %s117_s1 = inlined_call_operand.hbm [shape: f32[1,2048], index: 1, kind: output, shape index: {}]  }
   0x1   :  { %7 = vsyncpa [#allocation4], 0  ;;  %s13_s8 = sshll.u32 %s116_s0, 4  ;;  %s98_s9 = smov [#allocation2]   ;;  %s14_s8 = int_to_ptr.hbm [resolvable:$true] %s13_s8 }
   0x2   :  { %s15_s10 = sshll.u32 %s98_s9, 4  ;;  %s16_s10 = int_to_ptr.vmem [resolvable:$true] %s15_s10 }
   0x3   :  { %18 = dma.hbm_to_vmem [thread:$0]  %s14_s8, 256, %s16_s10, [#allocation3]  }
   0x4   :  { %94 = dma.done.wait [#allocation3], 256  }
   0x5   :  { %95 = vsyncadd [#allocation3], 4294967040  ;;  %s99_s11 = smov [#allocation5]   ;;  %s34_s15 = sshll.u32 %s117_s1, 4  ;;  %v23_v0 = vld [vmem:[#allocation2] sm:$0xff]  ;;  %v24_v1 = vld [vmem:[#allocation2 + $0x8] sm:$0xff]  ;;  %s35_s15 = int_to_ptr.hbm [resolvable:$true] %s34_s15 }
   0x6   :  { %s32_s12 = sshll.u32 %s99_s11, 4  ;;  %25 = vst [vmem:[#allocation5] sm:$0xff] %v23_v0  ;;  %s33_s12 = int_to_ptr.vmem [resolvable:$true] %s32_s12 }
   0x7   :  { %26 = vst [vmem:[#allocation5 + $0x8] sm:$0xff] %v24_v1 }
   0x8   :  { %37 = dma.vmem_to_hbm [thread:$0]  %s33_s12, 256, %s35_s15, [#allocation4]  }
   0x9   :  { %96 = dma.done.wait [#allocation4], 256  }
   0xa   :  { %97 = vsyncadd [#allocation4], 4294967040 }
   0xb   :  { %42 = vsyncpa [#allocation3], 1 }
   0xc   :  { %43 = vsyncpa [#allocation4], 1 }

</bundles_post_ra>
